<compile_context>
chip_gen: v7x
topology: tpu7x:2x2x1
jax: 0.10.0
libtpu: 0.0.40
codegen_flags: <defaults>
</compile_context>

<pallas_src>
import functools

import jax
import jax.numpy as jnp
from jax.experimental import pallas as pl
from jax.experimental.pallas import tpu as pltpu

_NEG_BIG = -1e30          # Python float: finite "-inf", never a traced constant
_LN_EPS = 1e-5
_VMEM_LIMIT = 48 * 1024 * 1024   # <= v7x's 64 MiB physical VMEM


# -----------------------------------------------------------------------------
# Kernel 1: fused LayerNorm + matmul:  y = (scale * norm(x) + shift) @ W
#   grid = (B, T//tr, N//tn); LayerNorm computed once per row tile (n == 0) and
#   cached in VMEM scratch, reused for every N tile of the weight.
# -----------------------------------------------------------------------------
def _ln_matmul_kernel(x_ref, scale_ref, shift_ref, w_ref, o_ref, xn_s, *,
                      eps, compute_dtype):
    @pl.when(pl.program_id(2) == 0)
    def _compute_norm():
        x = x_ref[0]                                           # (tr, D) f32
        mean = jnp.mean(x, axis=-1, keepdims=True)
        cen = x - mean
        var = jnp.mean(cen * cen, axis=-1, keepdims=True)      # unbiased=False
        xn = cen * jax.lax.rsqrt(var + eps)
        xn = xn * scale_ref[...] + shift_ref[...]              # (1, D) broadcast
        xn_s[...] = xn.astype(compute_dtype)

    o_ref[0] = jnp.dot(xn_s[...], w_ref[...],
                       preferred_element_type=jnp.float32).astype(o_ref.dtype)


def layernorm_matmul(x, scale, shift, w, *, tr=None, tn=None,
                     compute_dtype=jnp.bfloat16, out_dtype=None, eps=_LN_EPS):
    """x: (B, T, D) f32; scale/shift: (1, D) f32; w: (D, N).

    Returns (B, T, N) in out_dtype (default f32)."""
    B, T, D = x.shape
    N = w.shape[1]
    out_dtype = jnp.float32 if out_dtype is None else out_dtype
    tr = min(T, 256) if tr is None else tr
    tn = N if tn is None else tn
    assert T % tr == 0 and N % tn == 0
    assert tn == N or tn % 128 == 0

    w = w.astype(compute_dtype)       # halve weight DMA / VMEM for bf16 path
    kernel = functools.partial(_ln_matmul_kernel, eps=eps,
                               compute_dtype=compute_dtype)
    return pl.pallas_call(
        kernel,
        out_shape=jax.ShapeDtypeStruct((B, T, N), out_dtype),
        grid_spec=pltpu.PrefetchScalarGridSpec(
            num_scalar_prefetch=0,
            grid=(B, T // tr, N // tn),                 # N (weight-stream) last
            in_specs=[
                pl.BlockSpec((1, tr, D), lambda b, r, n: (b, r, 0)),
                pl.BlockSpec((1, D), lambda b, r, n: (0, 0)),
                pl.BlockSpec((1, D), lambda b, r, n: (0, 0)),
                pl.BlockSpec((D, tn), lambda b, r, n: (0, n)),
            ],
            out_specs=pl.BlockSpec((1, tr, tn), lambda b, r, n: (b, r, n)),
            scratch_shapes=[pltpu.VMEM((tr, D), compute_dtype)],
        ),
        compiler_params=pltpu.CompilerParams(
            dimension_semantics=("parallel", "parallel", "arbitrary"),
            vmem_limit_bytes=_VMEM_LIMIT),
    )(x, scale, shift, w)


# -----------------------------------------------------------------------------
# Kernel 2: flash-style causal MHA + output projection + residual add
#   inputs: residual x (f32), fused qkv = LN(x) @ [Wq|Wk|Wv]  (B, T, 3D)
#   output: x + out_proj(attention(qkv))
# -----------------------------------------------------------------------------
def _flash_attn_kernel(x_ref, q_ref, k_ref, v_ref, wo_ref, bo_ref, o_ref,
                       m_s, l_s, acc_s, *, num_heads, head_dim, compute_dtype):
    qi = pl.program_id(1)
    ki = pl.program_id(2)
    nk = pl.num_programs(2)
    tq = q_ref.shape[1]
    tk = k_ref.shape[1]

    q_start = qi * tq
    kv_start = ki * tk
    contributes = kv_start <= q_start + (tq - 1)        # tile reaches diagonal
    needs_mask = (kv_start + tk - 1) > q_start           # tile crosses diagonal

    @pl.when(ki == 0)
    def _init():
        m_s[...] = jnp.full(m_s.shape, _NEG_BIG, jnp.float32)
        l_s[...] = jnp.zeros(l_s.shape, jnp.float32)
        acc_s[...] = jnp.zeros(acc_s.shape, jnp.float32)

    scale = 1.0 / (head_dim ** 0.5)

    def _tile_update(apply_mask):
        # Scale the whole q slab once (hoisted out of the head loop).
        q = (q_ref[0].astype(jnp.float32) * scale).astype(compute_dtype)  # (tq, D)
        k = k_ref[0]                                                      # (tk, D)
        v = v_ref[0]                                                      # (tk, D)

        if apply_mask:  # only diagonal tiles pay for the mask
            q_pos = q_start + jax.lax.broadcasted_iota(jnp.int32, (tq, tk), 0)
            k_pos = kv_start + jax.lax.broadcasted_iota(jnp.int32, (tq, tk), 1)
            causal_mask = k_pos > q_pos                    # True -> masked out

        m_prev = m_s[...]                                  # (tq, H)
        l_prev = l_s[...]
        acc_prev = acc_s[...]                              # (tq, D)

        new_m, new_l, new_acc = [], [], []
        for h in range(num_heads):                         # static unroll
            cols = slice(h * head_dim, (h + 1) * head_dim)
            # scores (tq, tk): q . k^T with f32 accumulation on the MXU
            s = jax.lax.dot_general(
                q[:, cols], k[:, cols],
                dimension_numbers=(((1,), (1,)), ((), ())),
                preferred_element_type=jnp.float32)
            if apply_mask:
                s = jnp.where(causal_mask, _NEG_BIG, s)

            m_p = m_prev[:, h:h + 1]                                   # (tq, 1)
            m_n = jnp.maximum(m_p, jnp.max(s, axis=-1, keepdims=True))
            alpha = jnp.exp(m_p - m_n)                                 # (tq, 1)
            p = jnp.exp(s - m_n)                                       # (tq, tk) f32
            new_l.append(alpha * l_prev[:, h:h + 1]
                         + jnp.sum(p, axis=-1, keepdims=True))
            new_acc.append(alpha * acc_prev[:, cols]
                           + jnp.dot(p.astype(compute_dtype), v[:, cols],
                                     preferred_element_type=jnp.float32))
            new_m.append(m_n)

        # ONE lane-dense full-slab store per scratch per kv step (no masked RMW).
        m_s[...] = jnp.concatenate(new_m, axis=-1)
        l_s[...] = jnp.concatenate(new_l, axis=-1)
        acc_s[...] = jnp.concatenate(new_acc, axis=-1)

    @pl.when(jnp.logical_and(contributes, needs_mask))
    def _diag_tile():
        _tile_update(apply_mask=True)

    @pl.when(jnp.logical_and(contributes, jnp.logical_not(needs_mask)))
    def _full_tile():
        _tile_update(apply_mask=False)

    @pl.when(ki == nk - 1)
    def _finalize():
        inv_l = 1.0 / l_s[...]                             # exact, (tq, H)
        acc = acc_s[...]
        ctx = jnp.concatenate(
            [acc[:, h * head_dim:(h + 1) * head_dim] * inv_l[:, h:h + 1]
             for h in range(num_heads)], axis=-1).astype(compute_dtype)
        out = jnp.dot(ctx, wo_ref[...],
                      preferred_element_type=jnp.float32) + bo_ref[...]
        o_ref[0] = (x_ref[0] + out).astype(o_ref.dtype)    # residual add


def attention_residual(x, qkv, w_o, b_o, *, num_heads, tq=None, tk=None,
                       compute_dtype=jnp.bfloat16):
    """x: (B, T, D) f32 residual; qkv: (B, T, 3D); w_o: (D, D); b_o: (1, D)."""
    B, T, D = x.shape
    assert qkv.shape == (B, T, 3 * D)
    assert D % num_heads == 0
    head_dim = D // num_heads
    tq = min(T, 256) if tq is None else tq
    tk = min(T, 256) if tk is None else tk
    assert T % tq == 0 and T % tk == 0
    nq, nk = T // tq, T // tk

    w_o = w_o.astype(compute_dtype)
    kernel = functools.partial(_flash_attn_kernel, num_heads=num_heads,
                               head_dim=head_dim, compute_dtype=compute_dtype)

    def kv_row(qi, ki):
        # Clamp so fully-masked (above-diagonal) kv steps repeat the previous
        # block index -> Pallas issues no new K/V DMA for skipped tiles.
        return jnp.minimum(ki, (qi * tq + tq - 1) // tk)

    return pl.pallas_call(
        kernel,
        out_shape=jax.ShapeDtypeStruct((B, T, D), x.dtype),
        grid_spec=pltpu.PrefetchScalarGridSpec(
            num_scalar_prefetch=0,
            grid=(B, nq, nk),                      # kv reduction axis last
            in_specs=[
                pl.BlockSpec((1, tq, D), lambda b, qi, ki: (b, qi, 0)),   # residual
                pl.BlockSpec((1, tq, D), lambda b, qi, ki: (b, qi, 0)),   # Q cols
                pl.BlockSpec((1, tk, D), lambda b, qi, ki: (b, kv_row(qi, ki), 1)),  # K cols
                pl.BlockSpec((1, tk, D), lambda b, qi, ki: (b, kv_row(qi, ki), 2)),  # V cols
                pl.BlockSpec((D, D), lambda b, qi, ki: (0, 0)),           # w_o (resident)
                pl.BlockSpec((1, D), lambda b, qi, ki: (0, 0)),           # b_o
            ],
            out_specs=pl.BlockSpec((1, tq, D), lambda b, qi, ki: (b, qi, 0)),
            scratch_shapes=[
                pltpu.VMEM((tq, num_heads), jnp.float32),   # running max  m
                pltpu.VMEM((tq, num_heads), jnp.float32),   # running sum  l
                pltpu.VMEM((tq, D), jnp.float32),           # unnormalized context
            ],
        ),
        compiler_params=pltpu.CompilerParams(
            dimension_semantics=("parallel", "parallel", "arbitrary"),
            vmem_limit_bytes=_VMEM_LIMIT),
    )(x, qkv, qkv, qkv, w_o, b_o)


# -----------------------------------------------------------------------------
# Full GPTModel forward
# -----------------------------------------------------------------------------
def gpt_forward(token_ids, params, *, num_heads, compute_dtype=jnp.bfloat16,
                tr=None, tq=None, tk=None):
    B, T = token_ids.shape
    # TODO(synk): embedding row gather and (eval-mode identity) dropout stay in
    # plain JAX; a Pallas version would use a scalar-prefetched DMA gather.
    x = jnp.take(params["tok_emb"], token_ids, axis=0) + params["pos_emb"][:T][None]
    x = x.astype(jnp.float32)

    for layer in params["blocks"]:
        # sub-layer 1: norm1 -> attention -> residual
        qkv = layernorm_matmul(x, layer["ln1_scale"], layer["ln1_shift"],
                               layer["w_qkv"], tr=tr,
                               compute_dtype=compute_dtype, out_dtype=compute_dtype)
        x = attention_residual(x, qkv, layer["w_o"], layer["b_o"],
                               num_heads=num_heads, tq=tq, tk=tk,
                               compute_dtype=compute_dtype)
        # sub-layer 2: norm2 -> the SAME attention module -> residual
        qkv = layernorm_matmul(x, layer["ln2_scale"], layer["ln2_shift"],
                               layer["w_qkv"], tr=tr,
                               compute_dtype=compute_dtype, out_dtype=compute_dtype)
        x = attention_residual(x, qkv, layer["w_o"], layer["b_o"],
                               num_heads=num_heads, tq=tq, tk=tk,
                               compute_dtype=compute_dtype)

    # final_norm -> out_head (bias-free), vocab N-tiled, f32 logits out.
    V = params["w_head"].shape[1]
    head_tn = 128 if (V % 128 == 0 and V > 128) else V
    return layernorm_matmul(x, params["lnf_scale"], params["lnf_shift"],
                            params["w_head"], tr=tr, tn=head_tn,
                            compute_dtype=compute_dtype, out_dtype=jnp.float32)


# -----------------------------------------------------------------------------
# Pure-JAX reference mirroring the PyTorch module (f32, eval mode)
# -----------------------------------------------------------------------------
def _layernorm_ref(x, scale, shift, eps=_LN_EPS):
    mean = jnp.mean(x, axis=-1, keepdims=True)
    var = jnp.mean((x - mean) ** 2, axis=-1, keepdims=True)
    return scale * ((x - mean) / jnp.sqrt(var + eps)) + shift


def _attention_ref(x, w_qkv, w_o, b_o, num_heads):
    B, T, D = x.shape
    hd = D // num_heads
    hp = jax.lax.Precision.HIGHEST
    wq, wk, wv = w_qkv[:, :D], w_qkv[:, D:2 * D], w_qkv[:, 2 * D:]

    def proj(w):
        y = jnp.einsum("btd,de->bte", x, w, precision=hp)
        return y.reshape(B, T, num_heads, hd).transpose(0, 2, 1, 3)

    q, k, v = proj(wq), proj(wk), proj(wv)
    s = jnp.einsum("bhqd,bhkd->bhqk", q, k, precision=hp)
    mask = jnp.triu(jnp.ones((T, T), bool), k=1)
    s = jnp.where(mask[None, None], -jnp.inf, s) / (hd ** 0.5)
    w = jax.nn.softmax(s, axis=-1)
    ctx = jnp.einsum("bhqk,bhkd->bhqd", w, v, precision=hp)
    ctx = ctx.transpose(0, 2, 1, 3).reshape(B, T, D)
    return jnp.einsum("btd,de->bte", ctx, w_o, precision=hp) + b_o.reshape(1, 1, D)


def gpt_forward_ref(token_ids, params, *, num_heads):
    B, T = token_ids.shape
    x = params["tok_emb"][token_ids] + params["pos_emb"][:T][None]
    for layer in params["blocks"]:
        x = x + _attention_ref(_layernorm_ref(x, layer["ln1_scale"], layer["ln1_shift"]),
                               layer["w_qkv"], layer["w_o"], layer["b_o"], num_heads)
        x = x + _attention_ref(_layernorm_ref(x, layer["ln2_scale"], layer["ln2_shift"]),
                               layer["w_qkv"], layer["w_o"], layer["b_o"], num_heads)
    x = _layernorm_ref(x, params["lnf_scale"], params["lnf_shift"])
    return jnp.einsum("btd,dv->btv", x, params["w_head"],
                      precision=jax.lax.Precision.HIGHEST)


# -----------------------------------------------------------------------------
if __name__ == "__main__":
    cfg = dict(vocab_size=256, context_length=8, embed_dim=128,
               n_heads=4, n_layers=2, drop_rate=0.0)
    B, T = 2, cfg["context_length"]
    D, V, H = cfg["embed_dim"], cfg["vocab_size"], cfg["n_heads"]

    keys = iter(jax.random.split(jax.random.PRNGKey(0), 32))

    def nrm(shape, s):
        return jax.random.normal(next(keys), shape, dtype=jnp.float32) * s

    params = {
        "tok_emb": nrm((V, D), 0.5),
        "pos_emb": nrm((cfg["context_length"], D), 0.5),
        "lnf_scale": 1.0 + nrm((1, D), 0.1),
        "lnf_shift": nrm((1, D), 0.1),
        "w_head": nrm((D, V), 0.02),
        "blocks": [],
    }
    for _ in range(cfg["n_layers"]):
        params["blocks"].append({
            "ln1_scale": 1.0 + nrm((1, D), 0.1),
            "ln1_shift": nrm((1, D), 0.1),
            "ln2_scale": 1.0 + nrm((1, D), 0.1),
            "ln2_shift": nrm((1, D), 0.1),
            "w_qkv": nrm((D, 3 * D), 0.05),   # [Wq.T | Wk.T | Wv.T]
            "w_o": nrm((D, D), 0.05),
            "b_o": nrm((1, D), 0.05),
        })

    token_ids = jax.random.randint(next(keys), (B, T), 0, V, dtype=jnp.int32)

    # f32 compute path (exact-semantics check)
    logits_f32 = gpt_forward(token_ids, params, num_heads=H,
                             compute_dtype=jnp.float32)
    logits_f32 = jax.block_until_ready(logits_f32)

    # bf16 MXU-operand path (recommended on v5e/v6e/v7x), f32 accumulation
    logits_bf16 = gpt_forward(token_ids, params, num_heads=H,
                              compute_dtype=jnp.bfloat16)
    logits_bf16 = jax.block_until_ready(logits_bf16)

    ref = jax.block_until_ready(gpt_forward_ref(token_ids, params, num_heads=H))

    assert logits_f32.shape == (B, T, V)
    assert jnp.allclose(logits_f32, ref, atol=2e-2, rtol=2e-2)
    assert bool(jnp.all(jnp.isfinite(logits_bf16)))
    assert jnp.allclose(logits_bf16, ref, atol=0.15, rtol=0.1)

    print("KERNEL_OK")
</pallas_src>

<mosaic_0001>
module attributes {stable_mosaic.version = 11 : i64} {
  func.func @_ln_matmul_kernel(%arg0: i32, %arg1: i32, %arg2: i32, %arg3: memref<1x8x128xf32, #tpu.memory_space<vmem>>, %arg4: memref<1x128xf32, #tpu.memory_space<vmem>>, %arg5: memref<1x128xf32, #tpu.memory_space<vmem>>, %arg6: memref<128x384xf32, #tpu.memory_space<vmem>>, %arg7: memref<1x8x384xf32, #tpu.memory_space<vmem>>, %arg8: memref<8x128xf32, #tpu.memory_space<vmem>>) attributes {dimension_semantics = [#tpu.dimension_semantics<parallel>, #tpu.dimension_semantics<parallel>, #tpu.dimension_semantics<arbitrary>], iteration_bounds = array<i64: 2, 1, 1>, scalar_prefetch = 0 : i64, scratch_operands = 1 : i64, tpu.core_type = #tpu.core_type<tc>, window_params = [{transform_indices = @transform_0, window_bounds = array<i64: 1, 8, 128>}, {pipeline_mode = #tpu.pipeline_mode<synchronous>, transform_indices = @transform_1, window_bounds = array<i64: 1, 128>}, {pipeline_mode = #tpu.pipeline_mode<synchronous>, transform_indices = @transform_2, window_bounds = array<i64: 1, 128>}, {transform_indices = @transform_3, window_bounds = array<i64: 128, 384>}, {transform_indices = @transform_4, window_bounds = array<i64: 1, 8, 384>}]} {
    %c0_i32 = arith.constant 0 : i32
    %0 = arith.cmpi eq, %arg2, %c0_i32 : i32
    %1 = arith.extui %0 : i1 to i32
    %c0_i32_0 = arith.constant 0 : i32
    %2 = arith.cmpi ne, %1, %c0_i32_0 : i32
    scf.if %2 {
      %c0_7 = arith.constant 0 : index
      %c0_8 = arith.constant 0 : index
      %c0_9 = arith.constant 0 : index
      %9 = vector.load %arg3[%c0_7, %c0_8, %c0_9] : memref<1x8x128xf32, #tpu.memory_space<vmem>>, vector<1x8x128xf32>
      %10 = vector.shape_cast %9 : vector<1x8x128xf32> to vector<8x128xf32>
      %cst_10 = arith.constant dense<0.000000e+00> : vector<8xf32>
      %11 = vector.multi_reduction <add>, %10, %cst_10 [1] : vector<8x128xf32> to vector<8xf32>
      %12 = vector.shape_cast %11 : vector<8xf32> to vector<8x1xf32>
      %cst_11 = arith.constant 1.280000e+02 : f32
      %13 = vector.broadcast %cst_11 : f32 to vector<8x1xf32>
      %14 = arith.divf %12, %13 : vector<8x1xf32>
      %15 = vector.broadcast %14 : vector<8x1xf32> to vector<8x128xf32>
      %16 = arith.subf %10, %15 : vector<8x128xf32>
      %17 = arith.mulf %16, %16 : vector<8x128xf32>
      %cst_12 = arith.constant dense<0.000000e+00> : vector<8xf32>
      %18 = vector.multi_reduction <add>, %17, %cst_12 [1] : vector<8x128xf32> to vector<8xf32>
      %19 = vector.shape_cast %18 : vector<8xf32> to vector<8x1xf32>
      %cst_13 = arith.constant 1.280000e+02 : f32
      %20 = vector.broadcast %cst_13 : f32 to vector<8x1xf32>
      %21 = arith.divf %19, %20 : vector<8x1xf32>
      %cst_14 = arith.constant 9.99999974E-6 : f32
      %22 = vector.broadcast %cst_14 : f32 to vector<8x1xf32>
      %23 = arith.addf %21, %22 : vector<8x1xf32>
      %24 = math.rsqrt %23 : vector<8x1xf32>
      %25 = vector.broadcast %24 : vector<8x1xf32> to vector<8x128xf32>
      %26 = arith.mulf %16, %25 : vector<8x128xf32>
      %c0_15 = arith.constant 0 : index
      %c0_16 = arith.constant 0 : index
      %27 = vector.load %arg4[%c0_15, %c0_16] : memref<1x128xf32, #tpu.memory_space<vmem>>, vector<1x128xf32>
      %28 = vector.broadcast %27 : vector<1x128xf32> to vector<8x128xf32>
      %29 = arith.mulf %26, %28 : vector<8x128xf32>
      %c0_17 = arith.constant 0 : index
      %c0_18 = arith.constant 0 : index
      %30 = vector.load %arg5[%c0_17, %c0_18] : memref<1x128xf32, #tpu.memory_space<vmem>>, vector<1x128xf32>
      %31 = vector.broadcast %30 : vector<1x128xf32> to vector<8x128xf32>
      %32 = arith.addf %29, %31 : vector<8x128xf32>
      %c0_19 = arith.constant 0 : index
      %c0_20 = arith.constant 0 : index
      %33 = vector.load %arg8[%c0_19, %c0_20] : memref<8x128xf32, #tpu.memory_space<vmem>>, vector<8x128xf32>
      tpu.vector_store %arg8[%c0_19, %c0_20], %32 {strides = array<i32>} : memref<8x128xf32, #tpu.memory_space<vmem>>, vector<8x128xf32>,
    } else {
    }
    %c0 = arith.constant 0 : index
    %c0_1 = arith.constant 0 : index
    %3 = vector.load %arg8[%c0, %c0_1] : memref<8x128xf32, #tpu.memory_space<vmem>>, vector<8x128xf32>
    %c0_2 = arith.constant 0 : index
    %c0_3 = arith.constant 0 : index
    %4 = vector.load %arg6[%c0_2, %c0_3] : memref<128x384xf32, #tpu.memory_space<vmem>>, vector<128x384xf32>
    %cst = arith.constant dense<0.000000e+00> : vector<8x384xf32>
    %5 = tpu.matmul %3, %4, %cst {dimension_numbers = #tpu.dot_dimension_numbers<[1], [0], [0], [1], [0, 0, 1, 1], [], []>} : vector<8x128xf32>, vector<128x384xf32>, vector<8x384xf32> -> vector<8x384xf32>
    %c0_4 = arith.constant 0 : index
    %c0_5 = arith.constant 0 : index
    %c0_6 = arith.constant 0 : index
    %6 = vector.load %arg7[%c0_4, %c0_5, %c0_6] : memref<1x8x384xf32, #tpu.memory_space<vmem>>, vector<1x8x384xf32>
    %7 = vector.shape_cast %6 : vector<1x8x384xf32> to vector<8x384xf32>
    %8 = vector.shape_cast %5 : vector<8x384xf32> to vector<1x8x384xf32>
    tpu.vector_store %arg7[%c0_4, %c0_5, %c0_6], %8 {strides = array<i32>} : memref<1x8x384xf32, #tpu.memory_space<vmem>>, vector<1x8x384xf32>,
    return
  }
  func.func @transform_0(%arg0: i32, %arg1: i32, %arg2: i32) -> (i32, i32, i32) {
    %c0_i32 = arith.constant 0 : i32
    %c0_i32_0 = arith.constant 0 : i32
    return %arg0, %arg1, %c0_i32 : i32, i32, i32
  }
  func.func @transform_1(%arg0: i32, %arg1: i32, %arg2: i32) -> (i32, i32) {
    %c0_i32 = arith.constant 0 : i32
    %c0_i32_0 = arith.constant 0 : i32
    %c0_i32_1 = arith.constant 0 : i32
    return %c0_i32, %c0_i32_0 : i32, i32
  }
  func.func @transform_2(%arg0: i32, %arg1: i32, %arg2: i32) -> (i32, i32) {
    %c0_i32 = arith.constant 0 : i32
    %c0_i32_0 = arith.constant 0 : i32
    %c0_i32_1 = arith.constant 0 : i32
    return %c0_i32, %c0_i32_0 : i32, i32
  }
  func.func @transform_3(%arg0: i32, %arg1: i32, %arg2: i32) -> (i32, i32) {
    %c0_i32 = arith.constant 0 : i32
    %c0_i32_0 = arith.constant 0 : i32
    return %c0_i32, %arg2 : i32, i32
  }
  func.func @transform_4(%arg0: i32, %arg1: i32, %arg2: i32) -> (i32, i32, i32) {
    %c0_i32 = arith.constant 0 : i32
    return %arg0, %arg1, %arg2 : i32, i32, i32
  }
}

</mosaic_0001>

<bundles_post_ra>
// kernel: tpu_custom_call.1
= control target key start
LH: loop header
LB: loop body
LE: loop exit
PB: predicated region body
PF: predicated region fallthrough
CT: control target
= control target key end

     0   :  { %9 = vsyncpa [#allocation4], 0  ;;  %s1227_s0 = inlined_call_operand.hbm [shape: f32[2,8,128], index: 0, kind: input, shape index: {}]   ;;  %s1228_s1 = inlined_call_operand.vmem [shape: f32[1,128], index: 1, kind: input, shape index: {}]   ;;  %s1229_s2 = inlined_call_operand.vmem [shape: f32[1,128], index: 2, kind: input, shape index: {}]   ;;  %s1230_s3 = inlined_call_operand.hbm [shape: f32[128,384], index: 3, kind: input, shape index: {}]   ;;  %s1231_s4 = inlined_call_operand.hbm [shape: f32[2,8,384], index: 4, kind: output, shape index: {}]  }
   0x1   :  { %11 = vsyncpa [#allocation4 + $0x1], 0 }
   0x2   :  { %12 = vsyncpa [#allocation7], 0 }
   0x3   :  { %13 = vsyncpa [#allocation5], 0 }
   0x4   :  { %15 = vsyncpa [#allocation5 + $0x1], 0  ;;  %s993_s15 = smov 0   ;;  %s995_s16 = smov 0  }
   0x5   :  { %s997_s17 = smov 0   ;;  %s999_s18 = smov 0  }
   0x6   :  { %s1001_s19 = smov 0   ;;  %s1003_s20 = smov 0  }
   0x7 LB: > { %s609_s21 = sadd.s32 4294967295, %s958_s20   ;;  %s610_s22 = sadd.s32 4294967294, %s958_s20   ;;  %s958_s20 = sphi %s1003_s20, %s21_s20   ;;  %s954_s19 = sphi %s1001_s19, %s1255_s19   ;;  %s950_s18 = sphi %s999_s18, %s1254_s18   ;;  %s946_s17 = sphi %s997_s17, %s1253_s17   ;;  %s942_s16 = sphi %s995_s16, %s1252_s16   ;;  %s938_s15 = sphi %s993_s15, %s1251_s15  }
   0x8   : > { %p62_p0 = scmp.ne.s32.totalorder %s942_s16, %s938_s15  ;;  %p1027_p1 = scmp.eq.s32.totalorder %s609_s21, 0 }
   0x9   : > { %p1031_p2 = scmp.eq.s32.totalorder %s609_s21, 1  ;;  %p164_p3 = scmp.eq.s32.totalorder %s610_s22, 1 }
   0xa   : > { %s1236_s23 = scalar_select %p1027_p1, 1, 0 }
   0xb   : > { %s1237_s24 = scalar_select %p1031_p2, 1, 0 }
   0xc   : > { %p1037_p4 = por %p1027_p1, %p62_p0  ;;  %p611_p5 = scmp.ge.s32.totalorder %s958_s20, 1 }
   0xd   : > { %p1042_p6 = por %p164_p3, %p62_p0  ;;  %p171_p7 = scmp.lt.s32.totalorder %s958_s20, 3 }
   0xe   : > { %s1238_s25 = scalar_select %p1037_p4, 1, 0 }
   0xf   : > { %s1239_s26 = scalar_select %p1042_p6, 1, 0 }
  0x10   : > { %p1047_p8 = pnand %p611_p5, %p171_p7  ;;  %s960_s28 = smov [#allocation6]  }
  0x11   : > { %s192_s29 = sshll.u32 %s960_s28, 4  ;;  %s40_s5 = sadd.s32 1, %s954_s19  ;;  %s193_s29 = int_to_ptr.vmem [resolvable:$true] %s192_s29 }
  0x12   : > { %s1240_s27 = scalar_select %p1047_p8, 1, 0 }
  0x13   : > { %p742_p9 = pneg %p1047_p8  ;;  %s814_s8 = scalar_lea.hbm %s1230_s3, 6144 }
  0x14   : > { %p815_p12 = scmp.ne.s32.totalorder %s1230_s3, %s814_s8  ;;  %p821_p5 = scmp.lt.u32.totalorder %s814_s8, %s1230_s3 }
  0x15   : > { %p1056_p11 = pnand %p742_p9, %p1027_p1 }
  0x17   : > { %p816_p13 = pneg %p1056_p11 }
  0x19   : > { %p817_p0 = pnand %p816_p13, %p815_p12 }
  0x1b   : > { %p818_p3 = pneg %p817_p0 }
  0x1d   : > { %p823_p7 = pnand %p821_p5, %p818_p3 }
  0x1f   : > { %826 = shalt.err (!%p823_p7)
}
  0x20   : > { %s827_s13 = scalar_lea.vmem %s193_s29, 6144  ;;  %p835_p1 = scmp.lt.s32.totalorder %s193_s29, %s193_s29 }
  0x21   : > { %p828_p9 = scmp.ne.s32.totalorder %s193_s29, %s827_s13  ;;  %p836_p4 = scmp.lt.s32.totalorder %s827_s13, %s827_s13 }
  0x23   : > { %p830_p10 = pnand %p828_p9, %p816_p13  ;;  %p837_p8 = por %p836_p4, %p835_p1 }
  0x25   : > { %p831_p6 = pneg %p830_p10 }
  0x27   : > { %p838_p2 = pnand %p837_p8, %p831_p6 }
  0x29   : > { %841 = shalt.err (!%p838_p2)
}
  0x2a   : > { %s961_s14 = smov 384   ;;  %s962_s21 = smov 24  }
  0x2b   : > { %745 = dma.hbm_to_vmem [thread:$0]  (!%p1056_p11), %s1230_s3, 6144, %s193_s29, [#allocation7], %s961_s14, %s961_s14, %s962_s21  }
  0x2c   : > { %p42_p1 = scmp.ge.s32.totalorder %s40_s5, 2  ;;  %s49_s6 = sadd.s32 1, %s946_s17 }
  0x2d   : > { %p56_p2 = scmp.ne.s32.totalorder %s946_s17, %s942_s16  ;;  %p57_p4 = scmp.eq.s32.totalorder %s958_s20, 0 }
  0x2e   : > { %s1257_s5 = smov (%p42_p1, %s40_s5), 0  ;;  %p1243_p8 = scmp.ne.s32.totalorder %s1237_s24, 0 }
  0x2f   : > { %p1083_p6 = por %p57_p4, %p56_p2  ;;  %s44_s30 = ssub.s32 %s954_s19, %s1257_s5 }
  0x30   : > { %p1089_p10 = por %p1243_p8, %p56_p2  ;;  %p755_p12 = scmp.lt.s32.totalorder %s958_s20, 2 }
  0x31   : > { %p47_p11 = scmp.eq.s32.totalorder %s44_s30, 0  ;;  %s206_s29 = sand.u32 1, %s946_s17  }
  0x32   : > { %s614_s9 = sshll.u32 %s206_s29, 3  ;;  %s615_s11 = sshll.u32 %s954_s19, 7 }
  0x33   : > { %s1098_s10 = scalar_select %p47_p11, %s946_s17, %s49_s6  }
  0x34   : > { %s1104_s14 = scalar_lea.hbm %s1227_s0, %s615_s11  ;;  %s210_s24 = scalar_lea.vmem [#allocation3], %s614_s9 }
  0x35   : > { %s218_s21 = sshll.u32 %s210_s24, 4  ;;  %p1110_p13 = pnand %p755_p12, %p1083_p6  ;;  %s1106_s21 = int_to_ptr.vmem [resolvable:$true] %s218_s21 }
  0x36   : > { %s207_s28 = scalar_lea.sflag [#allocation4], %s206_s29  ;;  %s842_s6 = scalar_lea.hbm %s1104_s14, 128 }
  0x37   : > { %p843_p0 = scmp.ne.s32.totalorder %s1104_s14, %s842_s6  ;;  %p844_p3 = pneg %p1110_p13 }
  0x38   : > { %s847_s11 = scalar_lea.hbm %s1227_s0, 256  ;;  %p848_p9 = scmp.lt.u32.totalorder %s1104_s14, %s1227_s0 }
  0x39   : > { %p845_p5 = pnand %p844_p3, %p843_p0  ;;  %p849_p1 = scmp.lt.u32.totalorder %s847_s11, %s842_s6 }
  0x3a   : > { %p851_p4 = scmp.lt.u32.totalorder %s842_s6, %s1104_s14 }
  0x3b   : > { %p846_p7 = pneg %p845_p5  ;;  %p850_p2 = por %p849_p1, %p848_p9 }
  0x3d   : > { %p852_p6 = por %p851_p4, %p850_p2 }
  0x3f   : > { %p853_p8 = pnand %p852_p6, %p846_p7 }
  0x41   : > { %856 = shalt.err (!%p853_p8)
}
  0x42   : > { %s857_s29 = scalar_lea.vmem %s1106_s21, 128  ;;  %s963_s13 = smov [#allocation3]  }
  0x43   : > { %p858_p12 = scmp.ne.s32.totalorder %s1106_s21, %s857_s29  ;;  %s862_s24 = sshll.u32 %s963_s13, 4  ;;  %s863_s24 = int_to_ptr.vmem [resolvable:$false] %s862_s24 }
  0x44   : > { %s864_s30 = scalar_lea.vmem %s863_s24, 256  ;;  %p865_p5 = scmp.lt.s32.totalorder %s1106_s21, %s863_s24 }
  0x45   : > { %p860_p11 = pnand %p858_p12, %p844_p3  ;;  %p866_p9 = scmp.lt.s32.totalorder %s864_s30, %s857_s29 }
  0x47   : > { %p861_p0 = pneg %p860_p11  ;;  %p867_p1 = por %p866_p9, %p865_p5 }
  0x49   : > { %p868_p2 = pnand %p867_p1, %p861_p0 }
  0x4b   : > { %871 = shalt.err (!%p868_p2)
}
  0x4c   : > { %749 = dma.hbm_to_vmem [thread:$0]  (!%p1110_p13), %s1104_s14, 128, %s1106_s21, %s207_s28  }
  0x4d   : > { %p1246_p7 = scmp.ne.s32.totalorder %s1240_s27, 0 }
  0x4e   : > { %s1142_s6 = sand.u32 (!%p1246_p7), 1, %s942_s16   ;;  %p1247_p3 = scmp.ne.s32.totalorder (!%p1246_p7), %s1238_s25, 0 }
  0x4f   : > { %227 = sbr.rel (%p1246_p7) target bundleno = 629 (0x275), region = 36  ;;  %s617_s9 = sshll.u32 (!%p1246_p7), %s1142_s6, 3 }
  0x50   : > { %s230_s11 = scalar_lea.sflag (!%p1246_p7), [#allocation4], %s1142_s6  ;;  %s233_s7 = scalar_lea.vmem (!%p1246_p7), [#allocation3], %s617_s9 }
  0x56   : > { %925 = dma.done.wait (%p1247_p3), %s230_s11, 128  }
  0x57   : > { %927 = vsyncadd (%p1247_p3), %s230_s11, 4294967168  ;;  %p1248_p4 = scmp.ne.s32.totalorder %s1236_s23, 0 }
  0x59   : > { %929 = dma.done.wait (%p1248_p4), [#allocation7], 6144  }
  0x5a   : > { %931 = vsyncadd (%p1248_p4), [#allocation7], 4294961152  ;;  %v268_v0 = vld [vmem:[%s233_s7] sm:$0xff]  ;;  %v300_v1 = vld [vmem:[#allocation6 + $0x8] sm:$0xff]  ;;  %v964_v5 = vmov 0.0|0.0   ;;  %v965_v57 = vmov 0.0  }
  0x5b   : > { %269 = vadd.xlane.f32.xlu0 %v268_v0  ;;  %v303_v2 = vld [vmem:[#allocation6 + $0x20] sm:$0xff]  ;;  %708 = vmatprep.subr.bf16.mxu1 %v964_v5  ;;  %v302_v6 = vld [vmem:[#allocation6 + $0x18] sm:$0xff]  ;;  %v301_v7 = vld [vmem:[#allocation6 + $0x10] sm:$0xff]  ;;  %vm966_vm0 = vmmov 0   ;;  %s732_s21 = smul.u32 24, %s1142_s6  ;;  %s492_s30 = scalar_lea.sflag [#allocation5], %s1142_s6 }
  0x5c   : > { %v299_v3 = vld [vmem:[#allocation6] sm:$0xff]  ;;  %v676_v4 = vpack.c.bf16 %v303_v2, %v300_v1  ;;  %v304_v8 = vld [vmem:[#allocation6 + $0x28] sm:$0xff]  ;;  %v306_v11 = vld [vmem:[#allocation6 + $0x38] sm:$0xff]  ;;  %411 = vmatprep.mubr.f32.mxu0 %v965_v57  ;;  %673 = vmatprep.mubr.msk.f32.mxu1 %vm966_vm0, %v965_v57  ;;  %s733_s12 = smul.u32 384, %s950_s18  ;;  %s967_s18 = smov [#allocation8]  }
  0x5d   : > { %v678_v9 = vpack.c.bf16 %v302_v6, %v299_v3  ;;  %v709_v10 = vpack.c.bf16 %v304_v8, %v301_v7  ;;  %v309_v12 = vld [vmem:[#allocation6 + $0x50] sm:$0xff]  ;;  %v308_v15 = vld [vmem:[#allocation6 + $0x48] sm:$0xff]  ;;  %v307_v16 = vld [vmem:[#allocation6 + $0x40] sm:$0xff]  ;;  %s261_s22 = scalar_lea.vmem [#allocation8], %s732_s21  ;;  %s876_s11 = sshll.u32 %s967_s18, 4  ;;  %s877_s11 = int_to_ptr.vmem [resolvable:$false] %s876_s11 }
  0x5e   : > { %v305_v13 = vld [vmem:[#allocation6 + $0x30] sm:$0xff]  ;;  %677 = vmatprep.subr.bf16.mxu0 %v676_v4  ;;  %v680_v14 = vpack.c.bf16 %v309_v12, %v306_v11  ;;  %v310_v17 = vld [vmem:[#allocation6 + $0x58] sm:$0xff]  ;;  %v312_v20 = vld [vmem:[#allocation6 + $0x68] sm:$0xff]  ;;  %s510_s28 = sshll.u32 %s261_s22, 4  ;;  %s1180_s24 = scalar_lea.hbm %s1231_s4, %s733_s12  ;;  %s1175_s28 = int_to_ptr.vmem [resolvable:$true] %s510_s28 }
  0x5f   : > { %679 = vmatpush1.bf16.msra.mxu0 %v678_v9  ;;  %710 = vmatpush3.bf16.msra.mxu1 %v709_v10  ;;  %v682_v18 = vpack.c.bf16 %v308_v15, %v305_v13  ;;  %v712_v19 = vpack.c.bf16 %v310_v17, %v307_v16  ;;  %v315_v21 = vld [vmem:[#allocation6 + $0x80] sm:$0xff]  ;;  %v314_v24 = vld [vmem:[#allocation6 + $0x78] sm:$0xff]  ;;  %v313_v25 = vld [vmem:[#allocation6 + $0x70] sm:$0xff]  ;;  %s872_s9 = scalar_lea.vmem %s1175_s28, 384  ;;  %s878_s7 = scalar_lea.vmem %s877_s11, 768 }
  0x60   : > { %v311_v22 = vld [vmem:[#allocation6 + $0x60] sm:$0xff]  ;;  %681 = vmatprep.subr.bf16.mxu0 %v680_v14  ;;  %711 = vmatprep.subr.bf16.mxu1 %v964_v5  ;;  %v684_v23 = vpack.c.bf16 %v315_v21, %v312_v20  ;;  %v316_v26 = vld [vmem:[#allocation6 + $0x88] sm:$0xff]  ;;  %v318_v33 = vld [vmem:[#allocation6 + $0x98] sm:$0xff]  ;;  %p873_p13 = scmp.ne.s32.totalorder %s1175_s28, %s872_s9  ;;  %p879_p12 = scmp.lt.s32.totalorder %s1175_s28, %s877_s11 }
  0x61   : > { %v686_v27 = vpack.c.bf16 %v314_v24, %v311_v22  ;;  %v715_v28 = vpack.c.bf16 %v316_v26, %v313_v25  ;;  %v321_v34 = vld [vmem:[#allocation6 + $0xb0] sm:$0xff]  ;;  %v320_v37 = vld [vmem:[#allocation6 + $0xa8] sm:$0xff]  ;;  %v319_v38 = vld [vmem:[#allocation6 + $0xa0] sm:$0xff]  ;;  %p880_p11 = scmp.lt.s32.totalorder %s878_s7, %s872_s9 }
  0x62   : > { %v688_v35 = vpack.c.bf16 %v321_v34, %v318_v33  ;;  %v317_v36 = vld [vmem:[#allocation6 + $0x90] sm:$0xff]  ;;  %v322_v40 = vld [vmem:[#allocation6 + $0xb8] sm:$0xff]  ;;  %v324_v42 = vld [vmem:[#allocation6 + $0xc8] sm:$0xff]  ;;  %p874_p6 = pnand %p873_p13, %p1089_p10 }
  0x63   : > { %683 = vmatpush1.bf16.msra.mxu0 %v682_v18  ;;  %713 = vmatpush3.bf16.msra.mxu1 %v712_v19  ;;  %v690_v39 = vpack.c.bf16 %v320_v37, %v317_v36  ;;  %v718_v41 = vpack.c.bf16 %v322_v40, %v319_v38  ;;  %v327_v43 = vld [vmem:[#allocation6 + $0xe0] sm:$0xff]  ;;  %v326_v46 = vld [vmem:[#allocation6 + $0xd8] sm:$0xff]  ;;  %v325_v47 = vld [vmem:[#allocation6 + $0xd0] sm:$0xff]  ;;  %p881_p0 = por %p880_p11, %p879_p12 }
  0x64   : > { %685 = vmatprep.subr.bf16.mxu0 %v684_v23  ;;  %714 = vmatprep.subr.bf16.mxu1 %v964_v5  ;;  %v692_v44 = vpack.c.bf16 %v327_v43, %v324_v42  ;;  %v323_v45 = vld [vmem:[#allocation6 + $0xc0] sm:$0xff]  ;;  %v328_v49 = vld [vmem:[#allocation6 + $0xe8] sm:$0xff]  ;;  %v330_v50 = vld [vmem:[#allocation6 + $0xf8] sm:$0xff]  ;;  %p875_p8 = pneg %p874_p6 }
  0x65   : > { %v694_v48 = vpack.c.bf16 %v326_v46, %v323_v45  ;;  %v333_v51 = vld [vmem:[#allocation6 + $0x110] sm:$0xff]  ;;  %v721_v52 = vpack.c.bf16 %v328_v49, %v325_v47  ;;  %v332_v55 = vld [vmem:[#allocation6 + $0x108] sm:$0xff]  ;;  %v331_v56 = vld [vmem:[#allocation6 + $0x100] sm:$0xff] }
  0x66   : > { %v696_v53 = vpack.c.bf16 %v333_v51, %v330_v50  ;;  %v329_v54 = vld [vmem:[#allocation6 + $0xf0] sm:$0xff]  ;;  %v334_v59 = vld [vmem:[#allocation6 + $0x118] sm:$0xff]  ;;  %v336_v60 = vld [vmem:[#allocation6 + $0x128] sm:$0xff]  ;;  %p882_p5 = pnand %p881_p0, %p875_p8 }
  0x67   : > { %687 = vmatpush1.bf16.msra.mxu0 %v686_v27  ;;  %716 = vmatpush3.bf16.msra.mxu1 %v715_v28  ;;  %v698_v58 = vpack.c.bf16 %v332_v55, %v329_v54  ;;  %v339_v61 = vld [vmem:[#allocation6 + $0x140] sm:$0xff]  ;;  %v724_v62 = vpack.c.bf16 %v334_v59, %v331_v56  ;;  %v338_v1 = vld [vmem:[#allocation6 + $0x138] sm:$0xff]  ;;  %v337_v2 = vld [vmem:[#allocation6 + $0x130] sm:$0xff] }
  0x68   : > { %717 = vmatprep.subr.bf16.mxu1 %v964_v5  ;;  %689 = vmatprep.subr.bf16.mxu0 %v688_v35  ;;  %v700_v63 = vpack.c.bf16 %v339_v61, %v336_v60  ;;  %v340_v3 = vld [vmem:[#allocation6 + $0x148] sm:$0xff]  ;;  %v342_v4 = vld [vmem:[#allocation6 + $0x158] sm:$0xff]  ;;  %v345_v6 = vld [vmem:[#allocation6 + $0x170] sm:$0xff] }
  0x69   : > { %v727_v8 = vpack.c.bf16 %v340_v3, %v337_v2  ;;  %v704_v9 = vpack.c.bf16 %v345_v6, %v342_v4  ;;  %v341_v10 = vld [vmem:[#allocation6 + $0x150] sm:$0xff]  ;;  %v344_v11 = vld [vmem:[#allocation6 + $0x168] sm:$0xff]  ;;  %v343_v12 = vld [vmem:[#allocation6 + $0x160] sm:$0xff] }
  0x6a   : > { %v346_v13 = vld [vmem:[#allocation6 + $0x178] sm:$0xff]  ;;  %v706_v14 = vpack.c.bf16 %v344_v11, %v341_v10  ;;  %v619_v20 = vld [vmem:[%s1228_s1] ss:$0 sm:$0xff] }
  0x6b   : > { %691 = vmatpush1.bf16.msra.mxu0 %v690_v39  ;;  %719 = vmatpush3.bf16.msra.mxu1 %v718_v41  ;;  %v730_v15 = vpack.c.bf16 %v346_v13, %v343_v12  ;;  %v620_v22 = vld [vmem:[%s1229_s2] ss:$0 sm:$0xff] }
  0x6c   : > { %720 = vmatprep.subr.bf16.mxu1 %v964_v5  ;;  %693 = vmatprep.subr.bf16.mxu0 %v692_v44 }
  0x6f   : > { %695 = vmatpush1.bf16.msra.mxu0 %v694_v48  ;;  %722 = vmatpush3.bf16.msra.mxu1 %v721_v52 }
  0x70   : > { %697 = vmatprep.subr.bf16.mxu0 %v696_v53  ;;  %723 = vmatprep.subr.bf16.mxu1 %v964_v5 }
  0x73   : > { %699 = vmatpush1.bf16.msra.mxu0 %v698_v58  ;;  %725 = vmatpush3.bf16.msra.mxu1 %v724_v62 }
  0x74   : > { %701 = vmatprep.subr.bf16.mxu0 %v700_v63  ;;  %726 = vmatprep.subr.bf16.mxu1 %v964_v5 }
  0x77   : > { %728 = vmatpush3.bf16.msra.mxu1 %v727_v8 }
  0x78   : > { %729 = vmatprep.subr.bf16.mxu1 %v964_v5 }
  0x7b   : > { %731 = vmatpush3.bf16.msra.mxu1 %v730_v15 }
  0xe8   : > { %v270_v29 = vpop.xlane.xlu0 %269 }
  0xe9   : > { %v272_v30 = vmul.f32 0.0078125, %v270_v29 }
  0xeb   : > { %v1158_v31 = vsub.f32 %v268_v0, %v272_v30  ;;  %v335_v0 = vld [vmem:[#allocation6 + $0x120] sm:$0xff] }
  0xec   : > { %v702_v7 = vpack.c.bf16 %v338_v1, %v335_v0 }
  0xed   : > { %v274_v32 = vmul.f32 %v1158_v31, %v1158_v31 }
  0xee   : > { %703 = vmatpush1.bf16.msra.mxu0 %v702_v7 }
  0xef   : > { %275 = vadd.xlane.f32.xlu0 %v274_v32  ;;  %705 = vmatprep.subr.bf16.mxu0 %v704_v9 }
  0xf2   : > { %707 = vmatpush1.bf16.msra.mxu0 %v706_v14 }
 0x17c   : > { %v276_v16 = vpop.xlane.xlu0 %275 }
 0x17d   : > { %v277_v17 = vmul.f32 0.0078125, %v276_v16 }
 0x17f   : > { %v278_v18 = vadd.f32 1e-05, %v277_v17 }
 0x181   : > { %812 = vrsqrt.f32 %v278_v18 }
 0x18b   : > { %v813_v19 = vpop.eup %812 }
 0x18c   : > { %v280_v21 = vmul.f32 %v813_v19, %v1158_v31 }
 0x18e   : > { %v288_v23 = vmul.f32 %v619_v20, %v280_v21 }
 0x190   : > { %v296_v5 = vadd.f32 %v620_v22, %v288_v23 }
 0x192   : > { %412 = vmatmul.mubr.f32.vlgmr.msra.gmra.mrb[0].mxu0 %v296_v5  ;;  %674 = vmatmul.mubr.f32.vlgmr.msra.gmra.mrb[0].mxu1 %v296_v5 }
 0x265   : > { %v413_v24 = vpop.f32.mrb[0].mxu0  ;;  %v484_v25 = vpop.f32.mrb[0].mxu1 }
 0x266   : > { %488 = vst [vmem:[%s261_s22] sm:$0xff] %v413_v24  ;;  %490 = vst [vmem:[%s261_s22 + $0x10] sm:$0xff] %v484_v25  ;;  %v415_v26 = vpop.f32.mrb[1].mxu0  ;;  %v675_v27 = vpop.f32.mrb[1].mxu1 }
 0x267   : > { %489 = vst [vmem:[%s261_s22 + $0x8] sm:$0xff] %v415_v26 }
 0x268   : > { %885 = shalt.err (!%p882_p5)
}
 0x269   : > { %s886_s6 = scalar_lea.hbm %s1180_s24, 384  ;;  %s890_s27 = scalar_lea.hbm %s1231_s4, 768 }
 0x26a   : > { %p887_p9 = scmp.ne.s32.totalorder %s1180_s24, %s886_s6  ;;  %p891_p7 = scmp.lt.u32.totalorder %s1180_s24, %s1231_s4 }
 0x26b   : > { %p892_p3 = scmp.lt.u32.totalorder %s890_s27, %s886_s6  ;;  %p894_p13 = scmp.lt.u32.totalorder %s886_s6, %s1180_s24 }
 0x26c   : > { %p888_p1 = pnand %p887_p9, %p1089_p10 }
 0x26d   : > { %p893_p4 = por %p892_p3, %p891_p7 }
 0x26e   : > { %p889_p2 = pneg %p888_p1 }
 0x26f   : > { %p895_p6 = por %p894_p13, %p893_p4 }
 0x271   : > { %p896_p8 = pnand %p895_p6, %p889_p2 }
 0x273   : > { %899 = shalt.err (!%p896_p8)
}
 0x274   : > { %740 = dma.vmem_to_hbm [thread:$0]  (%p1089_p10), %s1175_s28, 384, %s1180_s24, %s492_s30  }
 0x275 PF: > { %s522_s22 = sand.u32 1, %s938_s15   ;;  %p1249_p12 = scmp.ne.s32.totalorder %s1239_s26, 0 }
 0x276   : > { %p1250_p11 = scmp.ge.s32.totalorder %s958_s20, 2  ;;  %s523_s12 = scalar_lea.sflag [#allocation5], %s522_s22 }
 0x278   : > { %p751_p0 = pnand %p1250_p11, %p1249_p12 }
 0x27a   : > { %933 = dma.done.wait (!%p751_p0), %s523_s12, 384  }
 0x27b   : > { %935 = vsyncadd (!%p751_p0), %s523_s12, 4294966912  ;;  %s21_s20 = sadd.s32 1, %s958_s20   ;;  %s1251_s15 = smov %s942_s16 }
 0x27c   : > { %p18_p5 = scmp.ge.s32.totalorder %s21_s20, 4   ;;  %s1252_s16 = smov %s946_s17 }
 0x27d   : > { %s1253_s17 = smov %s1098_s10  ;;  %s1254_s18 = smov %s954_s19 }
 0x27e   : > { %s1255_s19 = smov %s1257_s5  ;;  %20 = sbr.rel (!%p18_p5) target bundleno = 7 (0x7), region = 90 }
 0x285   :  { %528 = vsyncpa [#allocation4], 1 }
 0x286   :  { %530 = vsyncpa [#allocation4 + $0x1], 1 }
 0x287   :  { %531 = vsyncpa [#allocation7], 1 }
 0x288   :  { %532 = vsyncpa [#allocation5], 1 }
 0x289   :  { %534 = vsyncpa [#allocation5 + $0x1], 1 }

</bundles_post_ra>
